<compile_context>
chip_gen: v6e
topology: v6e:2x2x1
jax: 0.10.0
libtpu: 0.0.40
codegen_flags: <defaults>
</compile_context>

<pallas_src>
import jax
import jax.numpy as jnp
from jax.experimental import pallas as pl
from jax.experimental.pallas import tpu as pltpu

IN_FEATURES = 4
OUT_FEATURES = 3
LANES = 128          # vreg lane width
MAX_TILE_B = 512     # batch elements (lanes) per grid step


def linear_t_kernel(w_ref, b_ref, xt_ref, ot_ref):
    # w_ref:  (3, 4) f32 in SMEM   (PyTorch nn.Linear weight layout)
    # b_ref:  (3,)   f32 in SMEM
    # xt_ref: (4, TB) f32 in VMEM  (features on sublanes, batch on lanes)
    # ot_ref: (3, TB) f32 in VMEM  (logits, transposed)
    x = xt_ref[...]                                   # (4, TB)
    for c in range(OUT_FEATURES):                     # 3 output classes
        acc = x[0:1, :] * w_ref[c, 0]                 # scalar-broadcast FMA
        for k in range(1, IN_FEATURES):               # 4 input features
            acc = acc + x[k:k + 1, :] * w_ref[c, k]
        ot_ref[c:c + 1, :] = acc + b_ref[c]


def softmax_classifier_forward(x, weight, bias, *, min_pallas_batch=256):
    """logits = x @ weight.T + bias   (same semantics as nn.Linear(4, 3)).

    x:      (B, 4) float32
    weight: (3, 4) float32
    bias:   (3,)   float32
    returns (B, 3) float32 logits.
    """
    B, in_f = x.shape
    out_f = weight.shape[0]
    assert in_f == IN_FEATURES and out_f == OUT_FEATURES

    # Pallas launch overhead dwarfs the work at tiny B: let XLA fuse it.
    if B < min_pallas_batch:
        return x @ weight.T + bias

    # Tile the batch (lane) axis: TB multiple of 128, pad B up to a multiple.
    tb = min(MAX_TILE_B, pl.cdiv(B, LANES) * LANES)
    padded_b = pl.cdiv(B, tb) * tb
    n_tiles = padded_b // tb

    xt = x.T                                          # (4, B) lane-dense
    if padded_b != B:
        xt = jnp.pad(xt, ((0, 0), (0, padded_b - B)))

    out_t = pl.pallas_call(
        linear_t_kernel,
        out_shape=jax.ShapeDtypeStruct((out_f, padded_b), x.dtype),
        grid=(n_tiles,),
        in_specs=[
            pl.BlockSpec(memory_space=pltpu.MemorySpace.SMEM),   # weight (3,4)
            pl.BlockSpec(memory_space=pltpu.MemorySpace.SMEM),   # bias   (3,)
            pl.BlockSpec((in_f, tb), lambda i: (0, i)),          # x^T tile
        ],
        out_specs=pl.BlockSpec((out_f, tb), lambda i: (0, i)),   # logits^T tile
        compiler_params=pltpu.CompilerParams(
            dimension_semantics=("parallel",),                   # independent tiles
        ),
    )(weight, bias, xt)

    return out_t[:, :B].T                             # (B, 3)


if __name__ == "__main__":
    key = jax.random.PRNGKey(0)
    kx, kw, kb = jax.random.split(key, 3)

    # B deliberately not a multiple of the 512-lane tile -> exercises the
    # padded-tail path; still tiny (1000 x 4 floats).
    B = 1000

    # Deterministic "PyTorch-like" init: U(-1/sqrt(fan_in), 1/sqrt(fan_in)).
    bound = 1.0 / jnp.sqrt(jnp.float32(IN_FEATURES))
    weight = jax.random.uniform(kw, (OUT_FEATURES, IN_FEATURES), jnp.float32,
                                -bound, bound)
    bias = jax.random.uniform(kb, (OUT_FEATURES,), jnp.float32, -bound, bound)
    x = jax.random.normal(kx, (B, IN_FEATURES), jnp.float32)

    fwd = jax.jit(softmax_classifier_forward)
    out = jax.block_until_ready(fwd(x, weight, bias))

    # Reference check against plain JAX (same semantics as nn.Linear forward).
    ref = x @ weight.T + bias
    assert out.shape == (B, OUT_FEATURES)
    assert jnp.allclose(out, ref, atol=1e-5, rtol=1e-5)

    print("KERNEL_OK")
</pallas_src>

<mosaic_0001>
module attributes {stable_mosaic.version = 11 : i64} {
  func.func @linear_t_kernel(%arg0: i32, %arg1: memref<3x4xf32, #tpu.memory_space<smem>>, %arg2: memref<3xf32, #tpu.memory_space<smem>>, %arg3: memref<4x512xf32, #tpu.memory_space<vmem>>, %arg4: memref<3x512xf32, #tpu.memory_space<vmem>>) attributes {dimension_semantics = [#tpu.dimension_semantics<parallel>], iteration_bounds = array<i64: 2>, scalar_prefetch = 0 : i64, scratch_operands = 0 : i64, tpu.core_type = #tpu.core_type<tc>, window_params = [{transform_indices = @transform_0, window_bounds = array<i64: 3, 4>}, {transform_indices = @transform_1, window_bounds = array<i64: 3>}, {transform_indices = @transform_2, window_bounds = array<i64: 4, 512>}, {transform_indices = @transform_3, window_bounds = array<i64: 3, 512>}]} {
    %c0 = arith.constant 0 : index
    %c0_0 = arith.constant 0 : index
    %0 = vector.load %arg3[%c0, %c0_0] : memref<4x512xf32, #tpu.memory_space<vmem>>, vector<4x512xf32>
    %1 = vector.extract_strided_slice %0 {offsets = [0, 0], sizes = [1, 512], strides = [1, 1]} : vector<4x512xf32> to vector<1x512xf32>
    %c0_1 = arith.constant 0 : index
    %c0_2 = arith.constant 0 : index
    %2 = memref.load %arg1[%c0_1, %c0_2] : memref<3x4xf32, #tpu.memory_space<smem>>
    %3 = vector.broadcast %2 : f32 to vector<1x512xf32>
    %4 = arith.mulf %1, %3 : vector<1x512xf32>
    %5 = vector.extract_strided_slice %0 {offsets = [1, 0], sizes = [1, 512], strides = [1, 1]} : vector<4x512xf32> to vector<1x512xf32>
    %c0_3 = arith.constant 0 : index
    %c1 = arith.constant 1 : index
    %6 = memref.load %arg1[%c0_3, %c1] : memref<3x4xf32, #tpu.memory_space<smem>>
    %7 = vector.broadcast %6 : f32 to vector<1x512xf32>
    %8 = arith.mulf %5, %7 : vector<1x512xf32>
    %9 = arith.addf %4, %8 : vector<1x512xf32>
    %10 = vector.extract_strided_slice %0 {offsets = [2, 0], sizes = [1, 512], strides = [1, 1]} : vector<4x512xf32> to vector<1x512xf32>
    %c0_4 = arith.constant 0 : index
    %c2 = arith.constant 2 : index
    %11 = memref.load %arg1[%c0_4, %c2] : memref<3x4xf32, #tpu.memory_space<smem>>
    %12 = vector.broadcast %11 : f32 to vector<1x512xf32>
    %13 = arith.mulf %10, %12 : vector<1x512xf32>
    %14 = arith.addf %9, %13 : vector<1x512xf32>
    %15 = vector.extract_strided_slice %0 {offsets = [3, 0], sizes = [1, 512], strides = [1, 1]} : vector<4x512xf32> to vector<1x512xf32>
    %c0_5 = arith.constant 0 : index
    %c3 = arith.constant 3 : index
    %16 = memref.load %arg1[%c0_5, %c3] : memref<3x4xf32, #tpu.memory_space<smem>>
    %17 = vector.broadcast %16 : f32 to vector<1x512xf32>
    %18 = arith.mulf %15, %17 : vector<1x512xf32>
    %19 = arith.addf %14, %18 : vector<1x512xf32>
    %c0_6 = arith.constant 0 : index
    %20 = memref.load %arg2[%c0_6] : memref<3xf32, #tpu.memory_space<smem>>
    %21 = vector.broadcast %20 : f32 to vector<1x512xf32>
    %22 = arith.addf %19, %21 : vector<1x512xf32>
    %c0_7 = arith.constant 0 : index
    %c0_8 = arith.constant 0 : index
    %23 = vector.load %arg4[%c0_7, %c0_8] : memref<3x512xf32, #tpu.memory_space<vmem>>, vector<1x512xf32>
    tpu.vector_store %arg4[%c0_7, %c0_8], %22 {strides = array<i32>} : memref<3x512xf32, #tpu.memory_space<vmem>>, vector<1x512xf32>,
    %24 = vector.extract_strided_slice %0 {offsets = [0, 0], sizes = [1, 512], strides = [1, 1]} : vector<4x512xf32> to vector<1x512xf32>
    %c1_9 = arith.constant 1 : index
    %c0_10 = arith.constant 0 : index
    %25 = memref.load %arg1[%c1_9, %c0_10] : memref<3x4xf32, #tpu.memory_space<smem>>
    %26 = vector.broadcast %25 : f32 to vector<1x512xf32>
    %27 = arith.mulf %24, %26 : vector<1x512xf32>
    %28 = vector.extract_strided_slice %0 {offsets = [1, 0], sizes = [1, 512], strides = [1, 1]} : vector<4x512xf32> to vector<1x512xf32>
    %c1_11 = arith.constant 1 : index
    %c1_12 = arith.constant 1 : index
    %29 = memref.load %arg1[%c1_11, %c1_12] : memref<3x4xf32, #tpu.memory_space<smem>>
    %30 = vector.broadcast %29 : f32 to vector<1x512xf32>
    %31 = arith.mulf %28, %30 : vector<1x512xf32>
    %32 = arith.addf %27, %31 : vector<1x512xf32>
    %33 = vector.extract_strided_slice %0 {offsets = [2, 0], sizes = [1, 512], strides = [1, 1]} : vector<4x512xf32> to vector<1x512xf32>
    %c1_13 = arith.constant 1 : index
    %c2_14 = arith.constant 2 : index
    %34 = memref.load %arg1[%c1_13, %c2_14] : memref<3x4xf32, #tpu.memory_space<smem>>
    %35 = vector.broadcast %34 : f32 to vector<1x512xf32>
    %36 = arith.mulf %33, %35 : vector<1x512xf32>
    %37 = arith.addf %32, %36 : vector<1x512xf32>
    %38 = vector.extract_strided_slice %0 {offsets = [3, 0], sizes = [1, 512], strides = [1, 1]} : vector<4x512xf32> to vector<1x512xf32>
    %c1_15 = arith.constant 1 : index
    %c3_16 = arith.constant 3 : index
    %39 = memref.load %arg1[%c1_15, %c3_16] : memref<3x4xf32, #tpu.memory_space<smem>>
    %40 = vector.broadcast %39 : f32 to vector<1x512xf32>
    %41 = arith.mulf %38, %40 : vector<1x512xf32>
    %42 = arith.addf %37, %41 : vector<1x512xf32>
    %c1_17 = arith.constant 1 : index
    %43 = memref.load %arg2[%c1_17] : memref<3xf32, #tpu.memory_space<smem>>
    %44 = vector.broadcast %43 : f32 to vector<1x512xf32>
    %45 = arith.addf %42, %44 : vector<1x512xf32>
    %c1_18 = arith.constant 1 : index
    %c0_19 = arith.constant 0 : index
    %46 = vector.load %arg4[%c1_18, %c0_19] : memref<3x512xf32, #tpu.memory_space<vmem>>, vector<1x512xf32>
    tpu.vector_store %arg4[%c1_18, %c0_19], %45 {strides = array<i32>} : memref<3x512xf32, #tpu.memory_space<vmem>>, vector<1x512xf32>,
    %47 = vector.extract_strided_slice %0 {offsets = [0, 0], sizes = [1, 512], strides = [1, 1]} : vector<4x512xf32> to vector<1x512xf32>
    %c2_20 = arith.constant 2 : index
    %c0_21 = arith.constant 0 : index
    %48 = memref.load %arg1[%c2_20, %c0_21] : memref<3x4xf32, #tpu.memory_space<smem>>
    %49 = vector.broadcast %48 : f32 to vector<1x512xf32>
    %50 = arith.mulf %47, %49 : vector<1x512xf32>
    %51 = vector.extract_strided_slice %0 {offsets = [1, 0], sizes = [1, 512], strides = [1, 1]} : vector<4x512xf32> to vector<1x512xf32>
    %c2_22 = arith.constant 2 : index
    %c1_23 = arith.constant 1 : index
    %52 = memref.load %arg1[%c2_22, %c1_23] : memref<3x4xf32, #tpu.memory_space<smem>>
    %53 = vector.broadcast %52 : f32 to vector<1x512xf32>
    %54 = arith.mulf %51, %53 : vector<1x512xf32>
    %55 = arith.addf %50, %54 : vector<1x512xf32>
    %56 = vector.extract_strided_slice %0 {offsets = [2, 0], sizes = [1, 512], strides = [1, 1]} : vector<4x512xf32> to vector<1x512xf32>
    %c2_24 = arith.constant 2 : index
    %c2_25 = arith.constant 2 : index
    %57 = memref.load %arg1[%c2_24, %c2_25] : memref<3x4xf32, #tpu.memory_space<smem>>
    %58 = vector.broadcast %57 : f32 to vector<1x512xf32>
    %59 = arith.mulf %56, %58 : vector<1x512xf32>
    %60 = arith.addf %55, %59 : vector<1x512xf32>
    %61 = vector.extract_strided_slice %0 {offsets = [3, 0], sizes = [1, 512], strides = [1, 1]} : vector<4x512xf32> to vector<1x512xf32>
    %c2_26 = arith.constant 2 : index
    %c3_27 = arith.constant 3 : index
    %62 = memref.load %arg1[%c2_26, %c3_27] : memref<3x4xf32, #tpu.memory_space<smem>>
    %63 = vector.broadcast %62 : f32 to vector<1x512xf32>
    %64 = arith.mulf %61, %63 : vector<1x512xf32>
    %65 = arith.addf %60, %64 : vector<1x512xf32>
    %c2_28 = arith.constant 2 : index
    %66 = memref.load %arg2[%c2_28] : memref<3xf32, #tpu.memory_space<smem>>
    %67 = vector.broadcast %66 : f32 to vector<1x512xf32>
    %68 = arith.addf %65, %67 : vector<1x512xf32>
    %c2_29 = arith.constant 2 : index
    %c0_30 = arith.constant 0 : index
    %69 = vector.load %arg4[%c2_29, %c0_30] : memref<3x512xf32, #tpu.memory_space<vmem>>, vector<1x512xf32>
    tpu.vector_store %arg4[%c2_29, %c0_30], %68 {strides = array<i32>} : memref<3x512xf32, #tpu.memory_space<vmem>>, vector<1x512xf32>,
    return
  }
  func.func @transform_0(%arg0: i32) -> (i32, i32) {
    %c0_i32 = arith.constant 0 : i32
    %c0_i32_0 = arith.constant 0 : i32
    %c0_i32_1 = arith.constant 0 : i32
    return %c0_i32, %c0_i32_0 : i32, i32
  }
  func.func @transform_1(%arg0: i32) -> i32 {
    %c0_i32 = arith.constant 0 : i32
    %c0_i32_0 = arith.constant 0 : i32
    return %c0_i32 : i32
  }
  func.func @transform_2(%arg0: i32) -> (i32, i32) {
    %c0_i32 = arith.constant 0 : i32
    %c0_i32_0 = arith.constant 0 : i32
    return %c0_i32, %arg0 : i32, i32
  }
  func.func @transform_3(%arg0: i32) -> (i32, i32) {
    %c0_i32 = arith.constant 0 : i32
    %c0_i32_0 = arith.constant 0 : i32
    return %c0_i32, %arg0 : i32, i32
  }
}

</mosaic_0001>

<bundles_post_ra>
// kernel: softmax_classifier_forward.1
= control target key start
LH: loop header
LB: loop body
LE: loop exit
PB: predicated region body
PF: predicated region fallthrough
CT: control target
= control target key end

     0   :  { %8 = vsyncpa [#allocation3], 0  ;;  %s815_s0 = inlined_call_operand.vmem [shape: f32[3,4], index: 0, kind: input, shape index: {}]   ;;  %s816_s1 = inlined_call_operand.vmem [shape: f32[3], index: 1, kind: input, shape index: {}]   ;;  %s817_s2 = inlined_call_operand.vmem [shape: f32[4,1024], index: 2, kind: input, shape index: {}]   ;;  %s818_s3 = inlined_call_operand.vmem [shape: f32[3,1024], index: 3, kind: output, shape index: {}]  }
   0x1   :  { %9 = vsyncpa [#allocation5], 0  ;;  %s662_s12 = smov 0  }
   0x2 LB: > { %s515_s13 = sadd.s32 4294967295, %s637_s12   ;;  %p517_p0 = scmp.ge.s32.totalorder %s637_s12, 1  ;;  %s637_s12 = sphi %s662_s12, %s15_s12  }
   0x3   : > { %p114_p1 = scmp.lt.s32.totalorder %s637_s12, 3  ;;  %s127_s16 = sshll.u32 %s815_s0, 4  ;;  %s128_s16 = int_to_ptr.vmem [resolvable:$true] %s127_s16 }
   0x4   : > { %p679_p3 = scmp.eq.s32.totalorder %s515_s13, 0  ;;  %s138_s21 = sshll.u32 %s816_s1, 4  ;;  %s139_s21 = int_to_ptr.vmem [resolvable:$true] %s138_s21 }
   0x5   : > { %p673_p2 = pnand %p517_p0, %p114_p1  ;;  %s593_s23 = scalar_lea.vmem %s128_s16, 64 }
   0x6   : > { %s823_s18 = scalar_select %p679_p3, 1, 0 }
   0x7   : > { %s822_s17 = scalar_select %p673_p2, 1, 0 }
   0x8   : > { %p571_p4 = pneg %p673_p2  ;;  %p594_p6 = scmp.ne.s32.totalorder %s128_s16, %s593_s23 }
   0x9   : > { %p601_p10 = scmp.lt.s32.totalorder %s128_s16, %s128_s16  ;;  %p602_p11 = scmp.lt.s32.totalorder %s593_s23, %s593_s23 }
   0xa   : > { %p690_p5 = pnand %p679_p3, %p571_p4 }
   0xb   : > { %p603_p12 = por %p602_p11, %p601_p10 }
   0xc   : > { %p595_p7 = pneg %p690_p5 }
   0xe   : > { %p596_p8 = pnand %p595_p7, %p594_p6 }
  0x10   : > { %p597_p9 = pneg %p596_p8 }
  0x12   : > { %p604_p13 = pnand %p603_p12, %p597_p9 }
  0x14   : > { %607 = shalt.err (!%p604_p13)
}
  0x15   : > { %s639_s24 = smov [#allocation2]   ;;  %s608_s25 = scalar_lea.vmem %s139_s21, 16 }
  0x16   : > { %574 = dma.vmem_to_smem (!%p690_p5), %s128_s16, 64, %s639_s24, [#allocation3]  }
  0x17   : > { %p609_p0 = scmp.ne.s32.totalorder %s139_s21, %s608_s25  ;;  %p616_p3 = scmp.lt.s32.totalorder %s139_s21, %s139_s21 }
  0x18   : > { %p617_p2 = scmp.lt.s32.totalorder %s608_s25, %s608_s25 }
  0x19   : > { %p611_p1 = pnand %p609_p0, %p595_p7 }
  0x1a   : > { %p618_p6 = por %p617_p2, %p616_p3 }
  0x1b   : > { %p612_p4 = pneg %p611_p1 }
  0x1d   : > { %p619_p8 = pnand %p618_p6, %p612_p4 }
  0x1f   : > { %622 = shalt.err (!%p619_p8)
}
  0x20   : > { %s640_s26 = smov [#allocation4]   ;;  %p825_p9 = scmp.ne.s32.totalorder %s822_s17, 0 }
  0x21   : > { %577 = dma.vmem_to_smem (!%p690_p5), %s139_s21, 16, %s640_s26, [#allocation5]  }
  0x22   : > { %160 = sbr.rel (%p825_p9) target bundleno = 85 (0x55), region = 32  ;;  %p826_p10 = scmp.ne.s32.totalorder (!%p825_p9), %s823_s18, 0 }
  0x27   : > { %628 = dma.done.wait (%p826_p10), [#allocation3], 64  }
  0x28   : > { %630 = vsyncadd (%p826_p10), [#allocation3], 4294967232 }
  0x29   : > { %632 = dma.done.wait (%p826_p10), [#allocation5], 16  }
  0x2a   : > { %634 = vsyncadd (%p826_p10), [#allocation5], 4294967280 }
  0x2b   : > { %170 = sfence }
  0x2c   : > { %s524_s27 = sshll.u32 %s515_s13, 2  ;;  %s203_s28 = sld [smem:[#allocation2]]  ;;  %v641_v0 = vmov 1966171168   ;;  %v258_v2 = vlaneseq }
  0x2d   : > { %p190_p2 = scmp.lt.s32.totalorder %s524_s27, 7  ;;  %s528_s29 = sld [smem:[#allocation2 + $0x1]]  ;;  %v256_v1 = vunpack.c.l.s4 %v641_v0 }
  0x2e   : > { %s531_s30 = sld [smem:[#allocation2 + $0x2]]  ;;  %v259_v8 = vshrl.u32 %v258_v2, 7  ;;  %vm758_vm0 = vcmp.lt.s32.totalorder %v258_v2, 512 }
  0x2f   : > { %s830_s27 = smov (!%p190_p2, %s524_s27), 7  ;;  %s714_s4 = sld [smem:[#allocation2 + $0x3]]  ;;  %v257_v7 = vunpack.c.0.s8 %v256_v1 }
  0x30   : > { %s525_s5 = sshll.u32 %s830_s27, 2  ;;  %s717_s6 = sld [smem:[#allocation4]] }
  0x31   : > { %s193_s9 = scalar_lea.vmem %s817_s2, %s525_s5  ;;  %s537_s10 = sld [smem:[#allocation2 + $0x80]]  ;;  %v741_v19 = vsub.s32 %v257_v7, %v259_v8 }
  0x32   : > { %v204_v3 = vstv %s203_s28  ;;  %v724_v4 = vld [vmem:[%s193_s9] sm:$0xff]  ;;  %v726_v5 = vld [vmem:[%s193_s9 + $0x8] sm:$0xff]  ;;  %s732_s11 = sld [smem:[#allocation2 + $0x81]]  ;;  %s788_s23 = scalar_lea.vmem %s818_s3, %s525_s5 }
  0x33   : > { %v208_v6 = vstv %s528_s29  ;;  %v205_v9 = vmul.f32 %v204_v3, %v724_v4  ;;  %v206_v10 = vmul.f32 %v204_v3, %v726_v5  ;;  %s734_s13 = sld [smem:[#allocation2 + $0x82]] }
  0x34   : > { %v209_v11 = vmul.f32 %v208_v6, %v724_v4  ;;  %v210_v12 = vmul.f32 %v208_v6, %v726_v5  ;;  %v222_v13 = vstv %s531_s30  ;;  %s738_s14 = sld [smem:[#allocation2 + $0x83]] }
  0x35   : > { %v223_v16 = vmul.f32 %v222_v13, %v724_v4  ;;  %v224_v17 = vmul.f32 %v222_v13, %v726_v5  ;;  %v236_v18 = vstv %s714_s4  ;;  %s743_s15 = sld [smem:[#allocation4 + $0x1]] }
  0x36   : > { %v529_v14 = vrot.slane %v209_v11, 9  ;;  %v530_v15 = vrot.slane %v210_v12, 9  ;;  %s745_s16 = sld [smem:[#allocation2 + $0x100]]  ;;  %v237_v24 = vmul.f32 %v236_v18, %v724_v4  ;;  %v238_v25 = vmul.f32 %v236_v18, %v726_v5 }
  0x37   : > { %v532_v22 = vrot.slane %v223_v16, 10  ;;  %v533_v23 = vrot.slane %v224_v17, 10  ;;  %v250_v26 = vstv %s717_s6  ;;  %v284_v27 = vstv %s537_s10  ;;  %s750_s17 = sld [smem:[#allocation2 + $0x101]] }
  0x38   : > { %v219_v20 = vadd.f32 %v529_v14, %v205_v9  ;;  %v220_v21 = vadd.f32 %v530_v15, %v206_v10  ;;  %v285_v30 = vmul.f32 %v284_v27, %v724_v4  ;;  %v286_v31 = vmul.f32 %v284_v27, %v726_v5  ;;  %s756_s18 = sld [smem:[#allocation2 + $0x102]] }
  0x39   : > { %v535_v32 = vrot.slane %v237_v24, 11  ;;  %v536_v33 = vrot.slane %v238_v25, 11  ;;  %v288_v34 = vstv %s732_s11  ;;  %v302_v35 = vstv %s734_s13  ;;  %s768_s19 = sld [smem:[#allocation2 + $0x103]] }
  0x3a   : > { %v233_v28 = vadd.f32 %v532_v22, %v219_v20  ;;  %v234_v29 = vadd.f32 %v533_v23, %v220_v21  ;;  %v289_v37 = vmul.f32 %v288_v34, %v724_v4  ;;  %v290_v38 = vmul.f32 %v288_v34, %v726_v5  ;;  %s778_s20 = sld [smem:[#allocation4 + $0x2]] }
  0x3b   : > { %v303_v39 = vmul.f32 %v302_v35, %v724_v4  ;;  %v304_v40 = vmul.f32 %v302_v35, %v726_v5  ;;  %v316_v43 = vstv %s738_s14  ;;  %v330_v44 = vstv %s743_s15 }
  0x3c   : > { %v247_v41 = vadd.f32 %v535_v32, %v233_v28  ;;  %v248_v42 = vadd.f32 %v536_v33, %v234_v29  ;;  %v539_v45 = vrot.slane %v289_v37, 9  ;;  %v540_v46 = vrot.slane %v290_v38, 9 }
  0x3d   : > { %v542_v47 = vrot.slane %v303_v39, 10  ;;  %v543_v48 = vrot.slane %v304_v40, 10  ;;  %v317_v51 = vmul.f32 %v316_v43, %v724_v4  ;;  %v318_v52 = vmul.f32 %v316_v43, %v726_v5 }
  0x3e   : > { %v251_v49 = vadd.f32 %v250_v26, %v247_v41  ;;  %v252_v50 = vadd.f32 %v250_v26, %v248_v42  ;;  %v299_v53 = vadd.f32 %v539_v45, %v285_v30  ;;  %v300_v54 = vadd.f32 %v540_v46, %v286_v31 }
  0x3f   : > { %v361_v55 = vstv %s745_s16  ;;  %v365_v56 = vstv %s750_s17  ;;  %v545_v59 = vrot.slane %v317_v51, 11  ;;  %v546_v60 = vrot.slane %v318_v52, 11 }
  0x40   : > { %v261_v57 = vrot.slane %v251_v49, %v741_v19  ;;  %v268_v58 = vrot.slane %v252_v50, %v741_v19  ;;  %v313_v61 = vadd.f32 %v542_v47, %v299_v53  ;;  %v314_v62 = vadd.f32 %v543_v48, %v300_v54 }
  0x41   : > { %v362_v63 = vmul.f32 %v361_v55, %v724_v4  ;;  %v363_v0 = vmul.f32 %v361_v55, %v726_v5  ;;  %v366_v2 = vmul.f32 %v365_v56, %v724_v4  ;;  %v367_v3 = vmul.f32 %v365_v56, %v726_v5 }
  0x42   : > { %v269_v1 = vcombine.low %v261_v57, %v268_v58  ;;  %v379_v6 = vstv %s756_s18  ;;  %v327_v7 = vadd.f32 %v545_v59, %v313_v61  ;;  %v328_v8 = vadd.f32 %v546_v60, %v314_v62 }
  0x43   : > { %v380_v9 = vmul.f32 %v379_v6, %v724_v4  ;;  %v381_v10 = vmul.f32 %v379_v6, %v726_v5  ;;  %v551_v12 = vrot.slane %v366_v2, 9  ;;  %v552_v13 = vrot.slane %v367_v3, 9 }
  0x44   : > { %v276_v11 = vrot.slane %v269_v1, %v741_v19  ;;  %v393_v14 = vstv %s768_s19  ;;  %v331_v15 = vadd.f32 %v330_v44, %v327_v7  ;;  %v332_v16 = vadd.f32 %v330_v44, %v328_v8 }
  0x45   : > { %v554_v17 = vrot.slane %v380_v9, 10  ;;  %v555_v18 = vrot.slane %v381_v10, 10  ;;  %v376_v20 = vadd.f32 %v551_v12, %v362_v63  ;;  %v377_v21 = vadd.f32 %v552_v13, %v363_v0 }
  0x46   : > { %282 = vst.msk [vmem:[%s788_s23] ss:$4 sm:$0xf] %vm758_vm0, %v276_v11  ;;  %v394_v22 = vmul.f32 %v393_v14, %v724_v4  ;;  %v395_v23 = vmul.f32 %v393_v14, %v726_v5  ;;  %v341_v24 = vrot.slane %v331_v15, %v741_v19  ;;  %v348_v25 = vrot.slane %v332_v16, %v741_v19 }
  0x47   : > { %v390_v26 = vadd.f32 %v554_v17, %v376_v20  ;;  %v391_v27 = vadd.f32 %v555_v18, %v377_v21  ;;  %v407_v31 = vstv %s778_s20 }
  0x48   : > { %v557_v28 = vrot.slane %v394_v22, 11  ;;  %v558_v29 = vrot.slane %v395_v23, 11  ;;  %v349_v30 = vcombine.low %v341_v24, %v348_v25 }
  0x4a   : > { %v404_v32 = vadd.f32 %v557_v28, %v390_v26  ;;  %v405_v33 = vadd.f32 %v558_v29, %v391_v27  ;;  %v356_v34 = vrot.slane %v349_v30, %v741_v19 }
  0x4c   : > { %v408_v35 = vadd.f32 %v407_v31, %v404_v32  ;;  %v409_v37 = vadd.f32 %v407_v31, %v405_v33  ;;  %548 = vst.msk [vmem:[%s788_s23 + $0x1] ss:$4 sm:$0xf] %vm758_vm0, %v356_v34 }
  0x4e   : > { %v418_v4 = vrot.slane %v408_v35, %v741_v19  ;;  %v425_v5 = vrot.slane %v409_v37, %v741_v19 }
  0x50   : > { %v426_v38 = vcombine.low %v418_v4, %v425_v5 }
  0x52   : > { %v433_v39 = vrot.slane %v426_v38, %v741_v19 }
  0x54   : > { %560 = vst.msk [vmem:[%s788_s23 + $0x2] ss:$4 sm:$0xf] %vm758_vm0, %v433_v39 }
  0x55 PF: > { %s15_s12 = sadd.s32 1, %s637_s12  }
  0x56   : > { %p12_p3 = scmp.ge.s32.totalorder %s15_s12, 4  }
  0x58   :  { %14 = sbr.rel (!%p12_p3) target bundleno = 2 (0x2), region = 73 }
  0x5d   :  { %459 = vsyncpa [#allocation3], 1 }
  0x5e   :  { %461 = vsyncpa [#allocation3 + $0x1], 1 }
  0x5f   :  { %462 = vsyncpa [#allocation5], 1 }

</bundles_post_ra>
